<compile_context>
chip_gen: v5e
topology: v5e:2x2
jax: 0.10.0
libtpu: 0.0.40
codegen_flags: <defaults>
</compile_context>

<pallas_src>
import functools
import math

import jax
import jax.numpy as jnp
from jax.experimental import pallas as pl
from jax.experimental.pallas import tpu as pltpu

_MIB = 1024 * 1024


# ---------------------------------------------------------------------------
# Chip-aware sizing helpers
# ---------------------------------------------------------------------------
def _vmem_limit_bytes():
    """Scoped-VMEM limit derived from the actual chip (v7x: 64 MiB physical)."""
    try:
        cap = pltpu.get_tpu_info().vmem_capacity_bytes
    except Exception:
        cap = 64 * _MIB  # conservative fallback (v7x per-core VMEM)
    return int(min(cap * 3 // 4, 100 * _MIB))


def _round_up(x, m):
    return ((x + m - 1) // m) * m


def _pick_time_tile(T, Np, C, c_out, budget_bytes, max_unroll=16):
    """Largest divisor Tt of T (<= max_unroll) whose VMEM working set fits."""
    Cp, Op = max(C, 8), max(c_out, 8)  # sublane padding of tiny channel dims
    best = 1
    for d in range(1, min(T, max_unroll) + 1):
        if T % d:
            continue
        chunk = d * Np
        est = 4 * (2 * (Cp + 2 * Op) * chunk      # double-buffered x / xf / out blocks
                   + 2 * Cp * chunk               # q / k VMEM scratch
                   + 3 * Np * Np                  # live score / exp / prob tiles
                   + 2 * Cp * Cp + 4 * Cp + 2 * Np)
        if est <= budget_bytes:
            best = d
    return best


# ---------------------------------------------------------------------------
# Kernel 1: x_first_mul = mm(x.reshape(-1, c_in), weight)   (row-tiled matmul)
# Kept separate because x.reshape(-1, c_in) is a raw reinterpretation of the
# NCHW buffer, so its rows do not coincide with the per-(b, t) channel vectors
# kernel 2 consumes (full fusion would need a strided in-kernel gather).
# ---------------------------------------------------------------------------
def _xw_matmul_kernel(x_ref, w_ref, o_ref):
    o_ref[...] = jnp.dot(x_ref[...], w_ref[...], preferred_element_type=jnp.float32)


def xw_matmul_pallas(x_flat, weight, vmem_limit):
    m, k = x_flat.shape
    _, nc = weight.shape
    # Fixed row tile + cdiv grid: no divisor search, no single-huge-block fallback.
    tm_cap = 8192 if vmem_limit >= 64 * _MIB else 4096
    tm = m if m <= tm_cap else tm_cap
    return pl.pallas_call(
        _xw_matmul_kernel,
        out_shape=jax.ShapeDtypeStruct((m, nc), jnp.float32),
        grid=(pl.cdiv(m, tm),),
        in_specs=[
            pl.BlockSpec((tm, k), lambda i: (i, 0)),
            pl.BlockSpec((k, nc), lambda i: (0, 0)),  # constant block: no re-DMA
        ],
        out_specs=pl.BlockSpec((tm, nc), lambda i: (i, 0)),
        compiler_params=pltpu.CompilerParams(
            dimension_semantics=("parallel",),
            vmem_limit_bytes=vmem_limit),
    )(x_flat, weight)


# ---------------------------------------------------------------------------
# Kernel 2: fused attention matrix + graph aggregation + bias, per (b, Tt-chunk)
#   Q = (Wq/sqrt(d_k)) @ X + bq/sqrt(d_k)      (one MXU matmul for the chunk)
#   K =  Wk          @ X + bk
#   per t: S = Q_t^T K_t  (summing per-head QK^T over heads == full-C dot)
#          attn = softmax(S + key_mask) ; out_t = XF_t @ attn + bias_row
# ---------------------------------------------------------------------------
def _fused_attn_agg_kernel(Tt, Np, x_ref, xf_ref, wq_ref, bq_ref, wk_ref, bk_ref,
                           kmask_ref, brow_ref, o_ref, q_sc, k_sc):
    xm = x_ref[0]                                                      # (C, Tt*Np)
    # Whole-chunk Q/K projections, written to VMEM scratch so the per-t loop
    # below has bounded live ranges (no regalloc spill churn at large C).
    q_sc[...] = jnp.dot(wq_ref[...], xm,
                        preferred_element_type=jnp.float32) + bq_ref[...]
    k_sc[...] = jnp.dot(wk_ref[...], xm,
                        preferred_element_type=jnp.float32) + bk_ref[...]
    kmask = kmask_ref[...]                                             # (1, Np)
    brow = brow_ref[...]                                               # (1, Np)

    def body(t, carry):
        lo = pl.multiple_of(t * Np, 128)          # lane-aligned per-timestep offset
        q_t = q_sc[:, pl.ds(lo, Np)]                                   # (C, Np)
        k_t = k_sc[:, pl.ds(lo, Np)]                                   # (C, Np)
        # scores[n, m] = sum_c q_t[c, n] * k_t[c, m]: contract axis 0 of both so
        # the MXU consumes the transposed LHS directly (no per-t XLU transpose).
        s = jax.lax.dot_general(q_t, k_t, (((0,), (0,)), ((), ())),
                                preferred_element_type=jnp.float32)    # (Np, Np)
        s = s + kmask                              # -1e9 on padded key columns
        mx = jnp.max(s, axis=-1, keepdims=True)
        e = jnp.exp(s - mx)
        p = e * pl.reciprocal(jnp.sum(e, axis=-1, keepdims=True), approx=True)
        # TODO(synk): nn.Dropout(p=0.1) on p_attn is identity at inference;
        # training-mode random masking is not reproduced.
        xf_t = xf_ref[0, :, pl.ds(lo, Np)]                             # (c_out, Np)
        # Lane-dense (128-multiple), unmasked store of the whole timestep.
        o_ref[0, :, pl.ds(lo, Np)] = (
            jnp.dot(xf_t, p, preferred_element_type=jnp.float32) + brow)
        return carry

    jax.lax.fori_loop(0, Tt, body, 0, unroll=True)


def fused_attn_agg_pallas(x3p, xf3p, wq_s, bq_s, wk, bk, kmask, brow, Tt, Np,
                          vmem_limit):
    B, C, TNp = x3p.shape
    c_out = xf3p.shape[1]
    ntt = TNp // (Tt * Np)
    kernel = functools.partial(_fused_attn_agg_kernel, Tt, Np)
    chunk_map = lambda i: (i // ntt, 0, i % ntt)   # folded (B, T//Tt) grid axis
    const2 = lambda i: (0, 0)
    return pl.pallas_call(
        kernel,
        out_shape=jax.ShapeDtypeStruct((B, c_out, TNp), jnp.float32),
        grid=(B * ntt,),
        in_specs=[
            pl.BlockSpec((1, C, Tt * Np), chunk_map),
            pl.BlockSpec((1, c_out, Tt * Np), chunk_map),
            pl.BlockSpec((C, C), const2),
            pl.BlockSpec((C, 1), const2),
            pl.BlockSpec((C, C), const2),
            pl.BlockSpec((C, 1), const2),
            pl.BlockSpec((1, Np), const2),
            pl.BlockSpec((1, Np), const2),
        ],
        out_specs=pl.BlockSpec((1, c_out, Tt * Np), chunk_map),
        scratch_shapes=[pltpu.VMEM((C, Tt * Np), jnp.float32),
                        pltpu.VMEM((C, Tt * Np), jnp.float32)],
        compiler_params=pltpu.CompilerParams(
            dimension_semantics=("parallel",),
            vmem_limit_bytes=vmem_limit),
    )(x3p, xf3p, wq_s, bq_s, wk, bk, kmask, brow)


# ---------------------------------------------------------------------------
# GlobalConv forward (Pallas) + pure-JAX reference
# ---------------------------------------------------------------------------
def global_conv_pallas(x, params, *, h=4):
    B, C, T, N = x.shape
    c_out = params["weight"].shape[1]
    d_k = C // h
    inv_s = 1.0 / math.sqrt(d_k)
    vmem_limit = _vmem_limit_bytes()

    x = x.astype(jnp.float32)
    weight = params["weight"].astype(jnp.float32)

    # ---- kernel 1: x_first_mul ------------------------------------------------
    M = B * T * N
    xf_flat = xw_matmul_pallas(x.reshape(M, C), weight, vmem_limit)    # (M, c_out)
    xf4 = xf_flat.reshape(B, c_out, T, N)        # raw reinterpretation, as PyTorch

    # ---- pad the vertex axis to a lane-dense multiple of 128 -------------------
    Np = _round_up(N, 128)
    pad = Np - N
    if pad:
        x4p = jnp.pad(x, ((0, 0), (0, 0), (0, 0), (0, pad)))
        xf4p = jnp.pad(xf4, ((0, 0), (0, 0), (0, 0), (0, pad)))
    else:
        x4p, xf4p = x, xf4
    x3p = x4p.reshape(B, C, T * Np)              # free channel-major views
    xf3p = xf4p.reshape(B, c_out, T * Np)

    # additive key mask: padded key columns never receive softmax weight
    kmask = jnp.where(jnp.arange(Np) < N, 0.0, -1e9).astype(jnp.float32).reshape(1, Np)

    # fold 1/sqrt(d_k) into the Q projection
    wq_s = (params["wq"] * inv_s).astype(jnp.float32)
    bq_s = (params["bq"] * inv_s).reshape(C, 1).astype(jnp.float32)
    wk = params["wk"].astype(jnp.float32)
    bk = params["bk"].reshape(C, 1).astype(jnp.float32)

    # Bias is added on the raw reshape(-1, c_out) view: the column is the raw
    # memory offset mod c_out.  When N % c_out == 0 that is simply n % c_out, so
    # the bias folds into the kernel as a length-Np row; otherwise add it after
    # the final reshape (plain broadcast add).
    bias = params.get("bias", None)
    bias = None if bias is None else bias.astype(jnp.float32)
    fuse_bias = (bias is not None) and (N % c_out == 0)
    if fuse_bias:
        brow = jnp.concatenate(
            [jnp.tile(bias, N // c_out), jnp.zeros((pad,), jnp.float32)]).reshape(1, Np)
    else:
        brow = jnp.zeros((1, Np), jnp.float32)

    Tt = _pick_time_tile(T, Np, C, c_out, budget_bytes=vmem_limit // 2)

    out3p = fused_attn_agg_pallas(x3p, xf3p, wq_s, bq_s, wk, bk, kmask, brow,
                                  Tt, Np, vmem_limit)        # (B, c_out, T*Np)

    out4 = out3p.reshape(B, c_out, T, Np)[:, :, :, :N]        # drop vertex padding
    out_flat = out4.reshape(-1, c_out)                        # exact PyTorch reshape
    if (bias is not None) and (not fuse_bias):
        out_flat = out_flat + bias
    return out_flat


def global_conv_reference(x, params, *, h=4):
    """Pure-JAX transliteration of the PyTorch forward (eval mode)."""
    B, C, T, N = x.shape
    c_out = params["weight"].shape[1]
    d_k = C // h
    xp = jnp.transpose(x, (0, 2, 3, 1))
    q = xp @ params["wq"].T + params["bq"]
    k = xp @ params["wk"].T + params["bk"]
    qh = q.reshape(B, T, N, h, d_k).transpose(0, 1, 3, 2, 4)
    kh = k.reshape(B, T, N, h, d_k).transpose(0, 1, 3, 2, 4)
    scores = jnp.einsum("bthnd,bthmd->bthnm", qh, kh)
    scores = scores.sum(axis=2) / math.sqrt(d_k)
    attn = jax.nn.softmax(scores, axis=-1)
    xf = (x.reshape(-1, C) @ params["weight"]).reshape(B, c_out, T, N)
    xs = jnp.einsum("bjtm,btmn->bjtn", xf, attn).reshape(-1, c_out)
    return xs + params["bias"]


if __name__ == "__main__":
    # Small shapes consistent with the module: c_in == 2 * c_out (== d_model).
    B, c_out, T, N = 2, 4, 8, 16
    c_in = 2 * c_out                     # = 8 = d_model, h = 4, d_k = 2
    h = 4

    key = jax.random.PRNGKey(0)
    kx, kw, kb, kwq, kbq, kwk, kbk = jax.random.split(key, 7)

    # Deterministic synthetic parameters (shapes from the module __init__).
    w_bound = math.sqrt(6.0 / c_in)                 # kaiming-uniform-ish (relu)
    b_bound = 1.0 / math.sqrt(c_out)
    l_bound = 1.0 / math.sqrt(c_in)                 # nn.Linear default-ish
    params = {
        "weight": jax.random.uniform(kw, (c_in, c_out), jnp.float32, -w_bound, w_bound),
        "bias":   jax.random.uniform(kb, (c_out,),      jnp.float32, -b_bound, b_bound),
        "wq":     jax.random.uniform(kwq, (c_in, c_in), jnp.float32, -l_bound, l_bound),
        "bq":     jax.random.uniform(kbq, (c_in,),      jnp.float32, -l_bound, l_bound),
        "wk":     jax.random.uniform(kwk, (c_in, c_in), jnp.float32, -l_bound, l_bound),
        "bk":     jax.random.uniform(kbk, (c_in,),      jnp.float32, -l_bound, l_bound),
    }

    x = jax.random.normal(kx, (B, c_in, T, N), jnp.float32)

    out = jax.block_until_ready(global_conv_pallas(x, params, h=h))
    ref = jax.block_until_ready(global_conv_reference(x, params, h=h))

    assert out.shape == (B * T * N, c_out), out.shape
    assert jnp.allclose(out, ref, rtol=1e-2, atol=1e-2), (
        float(jnp.max(jnp.abs(out - ref))))

    print("KERNEL_OK")
</pallas_src>

<mosaic_0001>
module attributes {stable_mosaic.version = 11 : i64} {
  func.func @_xw_matmul_kernel(%arg0: i32, %arg1: memref<256x8xf32, #tpu.memory_space<vmem>>, %arg2: memref<8x4xf32, #tpu.memory_space<vmem>>, %arg3: memref<256x4xf32, #tpu.memory_space<vmem>>) attributes {dimension_semantics = [#tpu.dimension_semantics<parallel>], iteration_bounds = array<i64: 1>, scalar_prefetch = 0 : i64, scratch_operands = 0 : i64, tpu.core_type = #tpu.core_type<tc>, window_params = [{transform_indices = @transform_0, window_bounds = array<i64: 256, 8>}, {pipeline_mode = #tpu.pipeline_mode<synchronous>, transform_indices = @transform_1, window_bounds = array<i64: 8, 4>}, {transform_indices = @transform_2, window_bounds = array<i64: 256, 4>}]} {
    %c0 = arith.constant 0 : index
    %c0_0 = arith.constant 0 : index
    %0 = vector.load %arg1[%c0, %c0_0] : memref<256x8xf32, #tpu.memory_space<vmem>>, vector<256x8xf32>
    %c0_1 = arith.constant 0 : index
    %c0_2 = arith.constant 0 : index
    %1 = vector.load %arg2[%c0_1, %c0_2] : memref<8x4xf32, #tpu.memory_space<vmem>>, vector<8x4xf32>
    %cst = arith.constant dense<0.000000e+00> : vector<256x4xf32>
    %2 = tpu.matmul %0, %1, %cst {dimension_numbers = #tpu.dot_dimension_numbers<[1], [0], [0], [1], [0, 0, 1, 1], [], []>} : vector<256x8xf32>, vector<8x4xf32>, vector<256x4xf32> -> vector<256x4xf32>
    %c0_3 = arith.constant 0 : index
    %c0_4 = arith.constant 0 : index
    %3 = vector.load %arg3[%c0_3, %c0_4] : memref<256x4xf32, #tpu.memory_space<vmem>>, vector<256x4xf32>
    tpu.vector_store %arg3[%c0_3, %c0_4], %2 {strides = array<i32>} : memref<256x4xf32, #tpu.memory_space<vmem>>, vector<256x4xf32>,
    return
  }
  func.func @transform_0(%arg0: i32) -> (i32, i32) {
    %c0_i32 = arith.constant 0 : i32
    %c0_i32_0 = arith.constant 0 : i32
    return %arg0, %c0_i32 : i32, i32
  }
  func.func @transform_1(%arg0: i32) -> (i32, i32) {
    %c0_i32 = arith.constant 0 : i32
    %c0_i32_0 = arith.constant 0 : i32
    %c0_i32_1 = arith.constant 0 : i32
    return %c0_i32, %c0_i32_0 : i32, i32
  }
  func.func @transform_2(%arg0: i32) -> (i32, i32) {
    %c0_i32 = arith.constant 0 : i32
    %c0_i32_0 = arith.constant 0 : i32
    return %arg0, %c0_i32 : i32, i32
  }
}

</mosaic_0001>

<bundles_post_ra>
// kernel: tpu_custom_call.1
= control target key start
LH: loop header
LB: loop body
LE: loop exit
PB: predicated region body
PF: predicated region fallthrough
CT: control target
= control target key end

     0   :  { %vm44_vm0 = vcmask 64512   ;;  %vm254_vm1 = vcmask 31744   ;;  %s600_s1 = inlined_call_operand.vmem [shape: f32[8,4], index: 1, kind: input, shape index: {}]   ;;  %s601_s0 = inlined_call_operand.vmem [shape: f32[256,8], index: 0, kind: input, shape index: {}]   ;;  %s602_s2 = inlined_call_operand.vmem [shape: f32[256,4], index: 2, kind: output, shape index: {}]  }
   0x1   :  { %v43_v0 = vld [vmem:[%s600_s1] sm:$0xff]  ;;  %v28_v5 = vld [vmem:[%s601_s0 + $0x88] sm:$0xff]  ;;  %v29_v9 = vld [vmem:[%s601_s0 + $0x90] sm:$0xff] }
   0x2   :  { %v27_v1 = vld [vmem:[%s601_s0 + $0x80] sm:$0xff]  ;;  %324 = vmatpush.msra.mxu2 %v43_v0  ;;  %325 = vmatpush.msra.mxu3 %v43_v0  ;;  %v36_v6 = vld [vmem:[%s601_s0 + $0xc8] sm:$0xff]  ;;  %v37_v10 = vld [vmem:[%s601_s0 + $0xd0] sm:$0xff] }
   0x3   :  { %v35_v2 = vld [vmem:[%s601_s0 + $0xc0] sm:$0xff]  ;;  %307 = vmatmul.msk.f32.vlgmr.msra.gmra.mxu2 %vm44_vm0, %v27_v1  ;;  %156 = vmatpush.msra.mxu0 %v43_v0  ;;  %v12_v7 = vld [vmem:[%s601_s0 + $0x8] sm:$0xff]  ;;  %v13_v11 = vld [vmem:[%s601_s0 + $0x10] sm:$0xff] }
   0x4   :  { %v11_v3 = vld [vmem:[%s601_s0] sm:$0xff]  ;;  %315 = vmatmul.msk.f32.vlgmr.msra.gmra.mxu3 %vm44_vm0, %v35_v2  ;;  %323 = vmatpush.msra.mxu1 %v43_v0  ;;  %v20_v8 = vld [vmem:[%s601_s0 + $0x48] sm:$0xff]  ;;  %v21_v12 = vld [vmem:[%s601_s0 + $0x50] sm:$0xff] }
   0x5   :  { %v19_v4 = vld [vmem:[%s601_s0 + $0x40] sm:$0xff]  ;;  %291 = vmatmul.msk.f32.vlgmr.msra.gmra.mxu0 %vm44_vm0, %v11_v3  ;;  %v30_v13 = vld [vmem:[%s601_s0 + $0x98] sm:$0xff]  ;;  %v32_v21 = vld [vmem:[%s601_s0 + $0xa8] sm:$0xff] }
   0x6   :  { %299 = vmatmul.msk.f32.vlgmr.msra.gmra.mxu1 %vm44_vm0, %v19_v4  ;;  %v38_v14 = vld [vmem:[%s601_s0 + $0xd8] sm:$0xff]  ;;  %v31_v17 = vld [vmem:[%s601_s0 + $0xa0] sm:$0xff]  ;;  %v40_v22 = vld [vmem:[%s601_s0 + $0xe8] sm:$0xff] }
   0x7   :  { %v14_v15 = vld [vmem:[%s601_s0 + $0x18] sm:$0xff]  ;;  %v39_v18 = vld [vmem:[%s601_s0 + $0xe0] sm:$0xff]  ;;  %v16_v23 = vld [vmem:[%s601_s0 + $0x28] sm:$0xff] }
   0x8   :  { %v22_v16 = vld [vmem:[%s601_s0 + $0x58] sm:$0xff]  ;;  %v15_v19 = vld [vmem:[%s601_s0 + $0x20] sm:$0xff]  ;;  %v24_v24 = vld [vmem:[%s601_s0 + $0x68] sm:$0xff] }
   0x9   :  { %v23_v20 = vld [vmem:[%s601_s0 + $0x60] sm:$0xff]  ;;  %v33_v25 = vld [vmem:[%s601_s0 + $0xb0] sm:$0xff]  ;;  %v34_v29 = vld [vmem:[%s601_s0 + $0xb8] sm:$0xff] }
   0xa   :  { %v41_v26 = vld [vmem:[%s601_s0 + $0xf0] sm:$0xff]  ;;  %v42_v30 = vld [vmem:[%s601_s0 + $0xf8] sm:$0xff] }
   0xb   :  { %308 = vmatmul.msk.f32.gmra.mxu2 %vm44_vm0, %v28_v5  ;;  %v17_v27 = vld [vmem:[%s601_s0 + $0x30] sm:$0xff]  ;;  %v18_v31 = vld [vmem:[%s601_s0 + $0x38] sm:$0xff] }
   0xc   :  { %316 = vmatmul.msk.f32.gmra.mxu3 %vm44_vm0, %v36_v6  ;;  %v25_v28 = vld [vmem:[%s601_s0 + $0x70] sm:$0xff]  ;;  %v26_v32 = vld [vmem:[%s601_s0 + $0x78] sm:$0xff] }
   0xd   :  { %292 = vmatmul.msk.f32.gmra.mxu0 %vm44_vm0, %v12_v7 }
   0xe   :  { %300 = vmatmul.msk.f32.gmra.mxu1 %vm44_vm0, %v20_v8 }
  0x13   :  { %309 = vmatmul.msk.f32.gmra.mxu2 %vm44_vm0, %v29_v9 }
  0x14   :  { %317 = vmatmul.msk.f32.gmra.mxu3 %vm44_vm0, %v37_v10 }
  0x15   :  { %293 = vmatmul.msk.f32.gmra.mxu0 %vm44_vm0, %v13_v11 }
  0x16   :  { %301 = vmatmul.msk.f32.gmra.mxu1 %vm44_vm0, %v21_v12 }
  0x1b   :  { %310 = vmatmul.msk.f32.gmra.mxu2 %vm44_vm0, %v30_v13 }
  0x1c   :  { %318 = vmatmul.msk.f32.gmra.mxu3 %vm44_vm0, %v38_v14 }
  0x1d   :  { %294 = vmatmul.msk.f32.gmra.mxu0 %vm44_vm0, %v14_v15 }
  0x1e   :  { %302 = vmatmul.msk.f32.gmra.mxu1 %vm44_vm0, %v22_v16 }
  0x23   :  { %311 = vmatmul.msk.f32.gmra.mxu2 %vm44_vm0, %v31_v17 }
  0x24   :  { %319 = vmatmul.msk.f32.gmra.mxu3 %vm44_vm0, %v39_v18 }
  0x25   :  { %295 = vmatmul.msk.f32.gmra.mxu0 %vm44_vm0, %v15_v19 }
  0x26   :  { %303 = vmatmul.msk.f32.gmra.mxu1 %vm44_vm0, %v23_v20 }
  0x2b   :  { %312 = vmatmul.msk.f32.gmra.mxu2 %vm44_vm0, %v32_v21 }
  0x2c   :  { %320 = vmatmul.msk.f32.gmra.mxu3 %vm44_vm0, %v40_v22 }
  0x2d   :  { %296 = vmatmul.msk.f32.gmra.mxu0 %vm44_vm0, %v16_v23 }
  0x2e   :  { %304 = vmatmul.msk.f32.gmra.mxu1 %vm44_vm0, %v24_v24 }
  0x33   :  { %313 = vmatmul.msk.f32.gmra.mxu2 %vm44_vm0, %v33_v25 }
  0x34   :  { %321 = vmatmul.msk.f32.gmra.mxu3 %vm44_vm0, %v41_v26 }
  0x35   :  { %297 = vmatmul.msk.f32.gmra.mxu0 %vm44_vm0, %v17_v27 }
  0x36   :  { %305 = vmatmul.msk.f32.gmra.mxu1 %vm44_vm0, %v25_v28 }
  0x3b   :  { %314 = vmatmul.msk.f32.gmra.mxu2 %vm44_vm0, %v34_v29 }
  0x3c   :  { %322 = vmatmul.msk.f32.gmra.mxu3 %vm44_vm0, %v42_v30 }
  0x3d   :  { %298 = vmatmul.msk.f32.gmra.mxu0 %vm44_vm0, %v18_v31 }
  0x3e   :  { %306 = vmatmul.msk.f32.gmra.mxu1 %vm44_vm0, %v26_v32 }
  0x82   :  { %v158_v33 = vpop.f32.mrf.mxu0 }
  0x83   :  { %v182_v34 = vpop.f32.mrf.mxu1  ;;  %255 = vst.msk [vmem:[%s602_s2] sm:$0xff] %vm254_vm1, %v158_v33 }
  0x84   :  { %263 = vst.msk [vmem:[%s602_s2 + $0x40] sm:$0xff] %vm254_vm1, %v182_v34 }
  0x86   :  { %v206_v35 = vpop.f32.mrf.mxu2 }
  0x87   :  { %v230_v36 = vpop.f32.mrf.mxu3  ;;  %271 = vst.msk [vmem:[%s602_s2 + $0x80] sm:$0xff] %vm254_vm1, %v206_v35 }
  0x88   :  { %279 = vst.msk [vmem:[%s602_s2 + $0xc0] sm:$0xff] %vm254_vm1, %v230_v36 }
  0x8a   :  { %v161_v37 = vpop.f32.mrf.mxu0 }
  0x8b   :  { %v185_v38 = vpop.f32.mrf.mxu1  ;;  %256 = vst.msk [vmem:[%s602_s2 + $0x8] sm:$0xff] %vm254_vm1, %v161_v37 }
  0x8c   :  { %264 = vst.msk [vmem:[%s602_s2 + $0x48] sm:$0xff] %vm254_vm1, %v185_v38 }
  0x8e   :  { %v209_v39 = vpop.f32.mrf.mxu2 }
  0x8f   :  { %v233_v40 = vpop.f32.mrf.mxu3  ;;  %272 = vst.msk [vmem:[%s602_s2 + $0x88] sm:$0xff] %vm254_vm1, %v209_v39 }
  0x90   :  { %280 = vst.msk [vmem:[%s602_s2 + $0xc8] sm:$0xff] %vm254_vm1, %v233_v40 }
  0x92   :  { %v164_v41 = vpop.f32.mrf.mxu0 }
  0x93   :  { %v188_v42 = vpop.f32.mrf.mxu1  ;;  %257 = vst.msk [vmem:[%s602_s2 + $0x10] sm:$0xff] %vm254_vm1, %v164_v41 }
  0x94   :  { %265 = vst.msk [vmem:[%s602_s2 + $0x50] sm:$0xff] %vm254_vm1, %v188_v42 }
  0x96   :  { %v212_v43 = vpop.f32.mrf.mxu2 }
  0x97   :  { %v236_v44 = vpop.f32.mrf.mxu3  ;;  %273 = vst.msk [vmem:[%s602_s2 + $0x90] sm:$0xff] %vm254_vm1, %v212_v43 }
  0x98   :  { %281 = vst.msk [vmem:[%s602_s2 + $0xd0] sm:$0xff] %vm254_vm1, %v236_v44 }
  0x9a   :  { %v167_v45 = vpop.f32.mrf.mxu0 }
  0x9b   :  { %v191_v46 = vpop.f32.mrf.mxu1  ;;  %258 = vst.msk [vmem:[%s602_s2 + $0x18] sm:$0xff] %vm254_vm1, %v167_v45 }
  0x9c   :  { %266 = vst.msk [vmem:[%s602_s2 + $0x58] sm:$0xff] %vm254_vm1, %v191_v46 }
  0x9e   :  { %v215_v47 = vpop.f32.mrf.mxu2 }
  0x9f   :  { %v239_v48 = vpop.f32.mrf.mxu3  ;;  %274 = vst.msk [vmem:[%s602_s2 + $0x98] sm:$0xff] %vm254_vm1, %v215_v47 }
  0xa0   :  { %282 = vst.msk [vmem:[%s602_s2 + $0xd8] sm:$0xff] %vm254_vm1, %v239_v48 }
  0xa2   :  { %v170_v49 = vpop.f32.mrf.mxu0 }
  0xa3   :  { %v194_v50 = vpop.f32.mrf.mxu1  ;;  %259 = vst.msk [vmem:[%s602_s2 + $0x20] sm:$0xff] %vm254_vm1, %v170_v49 }
  0xa4   :  { %267 = vst.msk [vmem:[%s602_s2 + $0x60] sm:$0xff] %vm254_vm1, %v194_v50 }
  0xa6   :  { %v218_v51 = vpop.f32.mrf.mxu2 }
  0xa7   :  { %v242_v52 = vpop.f32.mrf.mxu3  ;;  %275 = vst.msk [vmem:[%s602_s2 + $0xa0] sm:$0xff] %vm254_vm1, %v218_v51 }
  0xa8   :  { %283 = vst.msk [vmem:[%s602_s2 + $0xe0] sm:$0xff] %vm254_vm1, %v242_v52 }
  0xaa   :  { %v173_v53 = vpop.f32.mrf.mxu0 }
  0xab   :  { %v197_v54 = vpop.f32.mrf.mxu1  ;;  %260 = vst.msk [vmem:[%s602_s2 + $0x28] sm:$0xff] %vm254_vm1, %v173_v53 }
  0xac   :  { %268 = vst.msk [vmem:[%s602_s2 + $0x68] sm:$0xff] %vm254_vm1, %v197_v54 }
  0xae   :  { %v221_v55 = vpop.f32.mrf.mxu2 }
  0xaf   :  { %v245_v56 = vpop.f32.mrf.mxu3  ;;  %276 = vst.msk [vmem:[%s602_s2 + $0xa8] sm:$0xff] %vm254_vm1, %v221_v55 }
  0xb0   :  { %284 = vst.msk [vmem:[%s602_s2 + $0xe8] sm:$0xff] %vm254_vm1, %v245_v56 }
  0xb2   :  { %v176_v57 = vpop.f32.mrf.mxu0 }
  0xb3   :  { %v200_v58 = vpop.f32.mrf.mxu1  ;;  %261 = vst.msk [vmem:[%s602_s2 + $0x30] sm:$0xff] %vm254_vm1, %v176_v57 }
  0xb4   :  { %269 = vst.msk [vmem:[%s602_s2 + $0x70] sm:$0xff] %vm254_vm1, %v200_v58 }
  0xb6   :  { %v224_v59 = vpop.f32.mrf.mxu2 }
  0xb7   :  { %v248_v60 = vpop.f32.mrf.mxu3  ;;  %277 = vst.msk [vmem:[%s602_s2 + $0xb0] sm:$0xff] %vm254_vm1, %v224_v59 }
  0xb8   :  { %285 = vst.msk [vmem:[%s602_s2 + $0xf0] sm:$0xff] %vm254_vm1, %v248_v60 }
  0xba   :  { %v179_v61 = vpop.f32.mrf.mxu0 }
  0xbb   :  { %v203_v62 = vpop.f32.mrf.mxu1  ;;  %262 = vst.msk [vmem:[%s602_s2 + $0x38] sm:$0xff] %vm254_vm1, %v179_v61 }
  0xbc   :  { %270 = vst.msk [vmem:[%s602_s2 + $0x78] sm:$0xff] %vm254_vm1, %v203_v62 }
  0xbe   :  { %v227_v63 = vpop.f32.mrf.mxu2 }
  0xbf   :  { %v251_v0 = vpop.f32.mrf.mxu3  ;;  %278 = vst.msk [vmem:[%s602_s2 + $0xb8] sm:$0xff] %vm254_vm1, %v227_v63 }
  0xc0   :  { %286 = vst.msk [vmem:[%s602_s2 + $0xf8] sm:$0xff] %vm254_vm1, %v251_v0 }

</bundles_post_ra>
